<compile_context>
chip_gen: v6e
topology: v6e:2x2x1
jax: 0.10.0
libtpu: 0.0.40
codegen_flags: <defaults>
</compile_context>

<pallas_src>
import functools

import jax
import jax.numpy as jnp
from jax.experimental import pallas as pl
from jax.experimental.pallas import tpu as pltpu


# ---------------------------------------------------------------------------
# Pallas kernel: fused 3x3 SAME conv + bias + ReLU via banded matmuls
# ---------------------------------------------------------------------------
def _conv3x3_rowband_kernel(x_ref, m_ref, b_ref, out_ref, *, tile_h):
    """One (batch, row-tile) step.

    x_ref:   (H+2, (W+2)*C)       f32   halo-padded rows, (w, c) merged on lanes
    m_ref:   (3, (W+2)*C, W*Cout) bf16  banded weight matrix per dh tap row
    b_ref:   (1, W*Cout)          f32   bias tiled across W (lane-dense)
    out_ref: (tile_h, W*Cout)     f32   lane-dense output rows
    """
    t = pl.program_id(1)
    h0 = pl.multiple_of(t * tile_h, tile_h)   # aligned dynamic row start

    # One aligned dynamic load of this row tile plus its 2-row bottom halo.
    # The three dh taps are then *static* sublane slices of the loaded value:
    # no unaligned dynamic slicing, no concat / im2col relayout through XLU.
    xa = x_ref[pl.ds(h0, tile_h + 2), :]      # (tile_h+2, (W+2)*C) f32

    acc = b_ref[...]                           # (1, W*Cout), broadcast over rows
    acc = acc + jnp.dot(xa[0:tile_h].astype(jnp.bfloat16), m_ref[0],
                        preferred_element_type=jnp.float32)
    acc = acc + jnp.dot(xa[1:tile_h + 1].astype(jnp.bfloat16), m_ref[1],
                        preferred_element_type=jnp.float32)
    acc = acc + jnp.dot(xa[2:tile_h + 2].astype(jnp.bfloat16), m_ref[2],
                        preferred_element_type=jnp.float32)
    out_ref[...] = jnp.maximum(acc, 0.0)       # single full, unmasked store


# ---------------------------------------------------------------------------
# Host-side helpers
# ---------------------------------------------------------------------------
def _build_banded_weights(taps, W):
    """taps (3, 3, C, Cout) -> banded matrices (3, (W+2)*C, W*Cout), bf16.

    M[dh, (w+dw)*C + c, w*Cout + co] = taps[dh, dw, c, co]; zero elsewhere.
    With this, out[h, w*Cout+co] = sum_dh x_pad[h+dh, :] @ M[dh]."""
    _, _, C, Cout = taps.shape
    eye = jnp.eye(W, dtype=taps.dtype)
    mats = []
    for dh in range(3):
        m = jnp.zeros(((W + 2) * C, W * Cout), taps.dtype)
        for dw in range(3):
            band = jnp.kron(eye, taps[dh, dw])          # (W*C, W*Cout) block-diag
            m = m.at[dw * C:dw * C + W * C, :].add(band)
        mats.append(m)
    return jnp.stack(mats).astype(jnp.bfloat16)


def _pallas_conv3x3_bias_relu(image_nhwc, taps, bias, *, tile_h=8):
    """image_nhwc (N,H,W,C) f32, taps (3,3,C,Cout) f32, bias (Cout,) f32
    -> (N, H, W, Cout) f32 NHWC."""
    N, H, W, C = image_nhwc.shape
    Cout = taps.shape[-1]
    if H % tile_h != 0:
        tile_h = H                       # degenerate fallback: one row tile
    wc_in = (W + 2) * C                  # merged lane width of padded input rows
    wco = W * Cout                       # merged lane width of output rows

    # Single small prep pass: merge (w, c) onto lanes and add the SAME halo
    # (1 row top/bottom, C merged lanes left/right).  No transposes.
    x_pad = jnp.pad(image_nhwc.reshape(N, H, W * C), ((0, 0), (1, 1), (C, C)))

    m_banded = _build_banded_weights(taps, W)                       # bf16
    b_lanes = jnp.tile(bias.astype(jnp.float32), W).reshape(1, wco)  # f32

    # VMEM per step (double-buffered): x block + banded weights + bias + out
    # tile — well under a MiB at these shapes.  Re-derive for real image
    # sizes so 2x(in + out) stays under ~48 MiB on v7x (64 MiB physical).
    kernel = functools.partial(_conv3x3_rowband_kernel, tile_h=tile_h)
    out = pl.pallas_call(
        kernel,
        out_shape=jax.ShapeDtypeStruct((N, H, wco), jnp.float32),
        grid_spec=pltpu.PrefetchScalarGridSpec(
            num_scalar_prefetch=0,
            grid=(N, H // tile_h),
            in_specs=[
                # Full padded rows per batch element; block index is constant
                # across the (inner) row-tile axis -> DMA'd once per n.
                pl.BlockSpec((pl.Squeezed(), H + 2, wc_in),
                             lambda n, t: (n, 0, 0)),
                pl.BlockSpec((3, wc_in, wco), lambda n, t: (0, 0, 0)),
                pl.BlockSpec((1, wco), lambda n, t: (0, 0)),
            ],
            out_specs=pl.BlockSpec((pl.Squeezed(), tile_h, wco),
                                   lambda n, t: (n, t, 0)),
        ),
        compiler_params=pltpu.CompilerParams(
            dimension_semantics=("parallel", "parallel"),
            vmem_limit_bytes=32 * 1024 * 1024,
        ),
    )(x_pad, m_banded, b_lanes)

    # Minor-dim split only (stays lane-dense); no transpose, no channel slice.
    return out.reshape(N, H, W, Cout)


# ---------------------------------------------------------------------------
# Synthetic wrapped model (stand-in for the unspecified self.model)
# ---------------------------------------------------------------------------
def _model_forward(image_nhwc, taps, bias, extra_dict, *, is_training=False):
    del is_training
    # TODO(synk): the real wrapped self.model is unspecified; the extra_dict
    # tensors (seg_idx_label, seg_label, lidar2img, pad_shape) feed no defined
    # compute, so a deterministic 3x3 conv + bias + ReLU backbone stands in.
    del extra_dict
    return _pallas_conv3x3_bias_relu(image_nhwc, taps, bias)


# ---------------------------------------------------------------------------
# ONNXWrapper equivalent
# ---------------------------------------------------------------------------
def onnx_wrapper_forward(image, weight_taps, bias, batch):
    """Mirrors ONNXWrapper.forward: builds extra_dict from `batch`, then calls
    the wrapped model with is_training=False."""
    extra_dict = {
        "seg_idx_label": batch["seg_idx_label"],
        "seg_label": batch["seg_label"],
        "lidar2img": batch["lidar2img"],
        "pad_shape": batch["pad_shape"],
        "ground_lanes": None,
        "ground_lanes_dense": None,
    }
    return _model_forward(image, weight_taps, bias, extra_dict, is_training=False)


# ---------------------------------------------------------------------------
# Pure-JAX f32 reference for the self-check
# ---------------------------------------------------------------------------
def _conv3x3_ref(x_nhwc, taps, bias):
    N, H, W, C = x_nhwc.shape
    Cout = taps.shape[-1]
    xp = jnp.pad(x_nhwc, ((0, 0), (1, 1), (1, 1), (0, 0)))
    out = jnp.zeros((N, H, W, Cout), jnp.float32)
    for dh in range(3):
        for dw in range(3):
            out = out + jnp.einsum("nhwc,co->nhwo",
                                   xp[:, dh:dh + H, dw:dw + W, :], taps[dh, dw])
    return jnp.maximum(out + bias.reshape(1, 1, 1, -1), 0.0)


if __name__ == "__main__":
    key = jax.random.PRNGKey(0)
    k_img, k_w, k_b, k_seg = jax.random.split(key, 4)

    # Small shapes consistent with an image-driven forward pass.  Activations
    # are kept NHWC end-to-end (PyTorch NCHW equivalent would be (2, 4, 16, 16));
    # W * Cout = 128 makes the kernel's output lanes exactly dense.
    N, H, W, C = 2, 16, 16, 4
    COUT = 8

    image = jax.random.normal(k_img, (N, H, W, C), dtype=jnp.float32)

    # Deterministic synthetic parameters (no checkpoint load).
    taps = (jax.random.normal(k_w, (3, 3, C, COUT), dtype=jnp.float32)
            * (1.0 / jnp.sqrt(9.0 * C)))
    bias = jax.random.normal(k_b, (COUT,), dtype=jnp.float32) * 0.1

    # Synthetic `batch` auxiliary tensors (mirroring ONNXWrapper's extra_dict).
    batch = {
        "seg_idx_label": jax.random.randint(k_seg, (N, H, W), 0, 4, jnp.int32),
        "seg_label": jnp.zeros((N, H, W), jnp.int32),
        "lidar2img": jnp.eye(4, dtype=jnp.float32)[None].repeat(N, axis=0),
        "pad_shape": jnp.array([[H, W]] * N, dtype=jnp.int32),
    }

    out = jax.jit(onnx_wrapper_forward)(image, taps, bias, batch)
    out = jax.block_until_ready(out)

    # Kernel uses bf16 MXU operands (weights + per-tile image slices) with f32
    # accumulation, so allow ~1e-2-level differences.
    ref = _conv3x3_ref(image, taps, bias)
    assert out.shape == (N, H, W, COUT)
    assert jnp.allclose(out, ref, atol=5e-2, rtol=5e-2)

    print("KERNEL_OK")
</pallas_src>

<mosaic_0001>
module attributes {stable_mosaic.version = 11 : i64} {
  func.func @_conv3x3_rowband_kernel(%arg0: i32, %arg1: i32, %arg2: memref<1x18x72xf32, #tpu.memory_space<vmem>>, %arg3: memref<3x72x128xbf16, #tpu.memory_space<vmem>>, %arg4: memref<1x128xf32, #tpu.memory_space<vmem>>, %arg5: memref<1x8x128xf32, #tpu.memory_space<vmem>>) attributes {dimension_semantics = [#tpu.dimension_semantics<parallel>, #tpu.dimension_semantics<parallel>], iteration_bounds = array<i64: 2, 2>, scalar_prefetch = 0 : i64, scratch_operands = 0 : i64, tpu.core_type = #tpu.core_type<tc>, window_params = [{transform_indices = @transform_0, window_bounds = array<i64: 1, 18, 72>}, {pipeline_mode = #tpu.pipeline_mode<synchronous>, transform_indices = @transform_1, window_bounds = array<i64: 3, 72, 128>}, {pipeline_mode = #tpu.pipeline_mode<synchronous>, transform_indices = @transform_2, window_bounds = array<i64: 1, 128>}, {transform_indices = @transform_3, window_bounds = array<i64: 1, 8, 128>}]} {
    %c8_i32 = arith.constant 8 : i32
    %0 = arith.muli %arg1, %c8_i32 : i32
    %1 = tpu.assume_multiple %0, 8 : i32
    %c0 = arith.constant 0 : index
    %2 = arith.index_cast %1 : i32 to index
    %c0_0 = arith.constant 0 : index
    %3 = vector.load %arg2[%c0, %2, %c0_0] : memref<1x18x72xf32, #tpu.memory_space<vmem>>, vector<1x10x72xf32>
    %4 = vector.shape_cast %3 : vector<1x10x72xf32> to vector<10x72xf32>
    %c0_1 = arith.constant 0 : index
    %c0_2 = arith.constant 0 : index
    %5 = vector.load %arg4[%c0_1, %c0_2] : memref<1x128xf32, #tpu.memory_space<vmem>>, vector<1x128xf32>
    %6 = vector.extract_strided_slice %4 {offsets = [0, 0], sizes = [8, 72], strides = [1, 1]} : vector<10x72xf32> to vector<8x72xf32>
    %7 = arith.truncf %6 : vector<8x72xf32> to vector<8x72xbf16>
    %c0_3 = arith.constant 0 : index
    %c0_4 = arith.constant 0 : index
    %c0_5 = arith.constant 0 : index
    %8 = vector.load %arg3[%c0_3, %c0_4, %c0_5] : memref<3x72x128xbf16, #tpu.memory_space<vmem>>, vector<1x72x128xbf16>
    %9 = vector.shape_cast %8 : vector<1x72x128xbf16> to vector<72x128xbf16>
    %cst = arith.constant dense<0.000000e+00> : vector<8x128xf32>
    %10 = tpu.matmul %7, %9, %cst {dimension_numbers = #tpu.dot_dimension_numbers<[1], [0], [0], [1], [0, 0, 1, 1], [], []>} : vector<8x72xbf16>, vector<72x128xbf16>, vector<8x128xf32> -> vector<8x128xf32>
    %11 = vector.broadcast %5 : vector<1x128xf32> to vector<8x128xf32>
    %12 = arith.addf %11, %10 : vector<8x128xf32>
    %13 = vector.extract_strided_slice %4 {offsets = [1, 0], sizes = [8, 72], strides = [1, 1]} : vector<10x72xf32> to vector<8x72xf32>
    %14 = arith.truncf %13 : vector<8x72xf32> to vector<8x72xbf16>
    %c1 = arith.constant 1 : index
    %c0_6 = arith.constant 0 : index
    %c0_7 = arith.constant 0 : index
    %15 = vector.load %arg3[%c1, %c0_6, %c0_7] : memref<3x72x128xbf16, #tpu.memory_space<vmem>>, vector<1x72x128xbf16>
    %16 = vector.shape_cast %15 : vector<1x72x128xbf16> to vector<72x128xbf16>
    %cst_8 = arith.constant dense<0.000000e+00> : vector<8x128xf32>
    %17 = tpu.matmul %14, %16, %cst_8 {dimension_numbers = #tpu.dot_dimension_numbers<[1], [0], [0], [1], [0, 0, 1, 1], [], []>} : vector<8x72xbf16>, vector<72x128xbf16>, vector<8x128xf32> -> vector<8x128xf32>
    %18 = arith.addf %12, %17 : vector<8x128xf32>
    %19 = vector.extract_strided_slice %4 {offsets = [2, 0], sizes = [8, 72], strides = [1, 1]} : vector<10x72xf32> to vector<8x72xf32>
    %20 = arith.truncf %19 : vector<8x72xf32> to vector<8x72xbf16>
    %c2 = arith.constant 2 : index
    %c0_9 = arith.constant 0 : index
    %c0_10 = arith.constant 0 : index
    %21 = vector.load %arg3[%c2, %c0_9, %c0_10] : memref<3x72x128xbf16, #tpu.memory_space<vmem>>, vector<1x72x128xbf16>
    %22 = vector.shape_cast %21 : vector<1x72x128xbf16> to vector<72x128xbf16>
    %cst_11 = arith.constant dense<0.000000e+00> : vector<8x128xf32>
    %23 = tpu.matmul %20, %22, %cst_11 {dimension_numbers = #tpu.dot_dimension_numbers<[1], [0], [0], [1], [0, 0, 1, 1], [], []>} : vector<8x72xbf16>, vector<72x128xbf16>, vector<8x128xf32> -> vector<8x128xf32>
    %24 = arith.addf %18, %23 : vector<8x128xf32>
    %cst_12 = arith.constant 0.000000e+00 : f32
    %25 = vector.broadcast %cst_12 : f32 to vector<8x128xf32>
    %26 = arith.maximumf %24, %25 : vector<8x128xf32>
    %c0_13 = arith.constant 0 : index
    %c0_14 = arith.constant 0 : index
    %c0_15 = arith.constant 0 : index
    %27 = vector.load %arg5[%c0_13, %c0_14, %c0_15] : memref<1x8x128xf32, #tpu.memory_space<vmem>>, vector<1x8x128xf32>
    %28 = vector.shape_cast %27 : vector<1x8x128xf32> to vector<8x128xf32>
    %29 = vector.shape_cast %26 : vector<8x128xf32> to vector<1x8x128xf32>
    tpu.vector_store %arg5[%c0_13, %c0_14, %c0_15], %29 {strides = array<i32>} : memref<1x8x128xf32, #tpu.memory_space<vmem>>, vector<1x8x128xf32>,
    return
  }
  func.func @transform_0(%arg0: i32, %arg1: i32) -> (i32, i32, i32) {
    %c0_i32 = arith.constant 0 : i32
    %c0_i32_0 = arith.constant 0 : i32
    %c0_i32_1 = arith.constant 0 : i32
    return %arg0, %c0_i32, %c0_i32_0 : i32, i32, i32
  }
  func.func @transform_1(%arg0: i32, %arg1: i32) -> (i32, i32, i32) {
    %c0_i32 = arith.constant 0 : i32
    %c0_i32_0 = arith.constant 0 : i32
    %c0_i32_1 = arith.constant 0 : i32
    %c0_i32_2 = arith.constant 0 : i32
    return %c0_i32, %c0_i32_0, %c0_i32_1 : i32, i32, i32
  }
  func.func @transform_2(%arg0: i32, %arg1: i32) -> (i32, i32) {
    %c0_i32 = arith.constant 0 : i32
    %c0_i32_0 = arith.constant 0 : i32
    %c0_i32_1 = arith.constant 0 : i32
    return %c0_i32, %c0_i32_0 : i32, i32
  }
  func.func @transform_3(%arg0: i32, %arg1: i32) -> (i32, i32, i32) {
    %c0_i32 = arith.constant 0 : i32
    %c0_i32_0 = arith.constant 0 : i32
    return %arg0, %arg1, %c0_i32 : i32, i32, i32
  }
}

</mosaic_0001>

<bundles_post_ra>
// kernel: tile.8
= control target key start
LH: loop header
LB: loop body
LE: loop exit
PB: predicated region body
PF: predicated region fallthrough
CT: control target
= control target key end

     0   :  { %s28_s0 = inlined_call_operand.vmem [shape: f32[8], index: 0, kind: input, shape index: {}]   ;;  %s29_s1 = inlined_call_operand.vmem [shape: f32[16,8], index: 1, kind: output, shape index: {}]  }
   0x1   :  { %v4_v0 = vld [vmem:[%s28_s0] ss:$0 sm:$0xff] }
   0x2   :  { %5 = vst [vmem:[%s29_s1] sm:$0xff] %v4_v0  ;;  %8 = vst [vmem:[%s29_s1 + $0x8] sm:$0xff] %v4_v0 }

// kernel: tile.9
= control target key start
LH: loop header
LB: loop body
LE: loop exit
PB: predicated region body
PF: predicated region fallthrough
CT: control target
= control target key end

     0   :  { %s133_s10 = smov 120   ;;  %s134_s11 = smov 104   ;;  %vm3_vm0 = vcmask 64512   ;;  %vm9_vm1 = vcmask 1048512   ;;  %vm15_vm2 = vcmask 982912   ;;  %vm21_vm3 = vcmask 917312   ;;  %s209_s0 = inlined_call_operand.vmem [shape: f32[16,8], index: 0, kind: input, shape index: {}]   ;;  %s210_s1 = inlined_call_operand.vmem [shape: f32[1,128], index: 1, kind: output, shape index: {}]  }
   0x1   :  { %v103_v0 = vld [vmem:[%s209_s0 + $0xf] sm:$0x1]   ;;  %v105_v1 = vld [vmem:[%s209_s0 + $0xd] sm:$0x1]   ;;  %v104_v2 = vld [vmem:[%s209_s0 + $0xe] sm:$0x1]  }
   0x2   :  { %7 = vrot.lane.b32.xlu0 %v103_v0, %s133_s10  ;;  %19 = vrot.lane.b32.xlu1 %v105_v1, %s134_s11  ;;  %v106_v3 = vld [vmem:[%s209_s0 + $0xc] sm:$0x1]   ;;  %s135_s16 = smov 112   ;;  %s136_s17 = smov 96   ;;  %v107_v4 = vld [vmem:[%s209_s0 + $0xb] sm:$0x1]  }
   0x3   :  { %v108_v5 = vld [vmem:[%s209_s0 + $0xa] sm:$0x1]   ;;  %v2_v6 = vld [vmem:[%s209_s0] sm:$0x1]   ;;  %s137_s24 = smov 88   ;;  %s138_s25 = smov 80  }
   0x4   :  { %4 = vst.msk [vmem:[#allocation0] sm:$0x1] %vm3_vm0, %v2_v6   ;;  %v109_v7 = vld [vmem:[%s209_s0 + $0x9] sm:$0x1]   ;;  %v110_v8 = vld [vmem:[%s209_s0 + $0x8] sm:$0x1]  }
   0x5   :  { %s139_s30 = smov 72   ;;  %s140_s2 = smov 64   ;;  %v111_v9 = vld [vmem:[%s209_s0 + $0x7] sm:$0x1]   ;;  %v112_v10 = vld [vmem:[%s209_s0 + $0x6] sm:$0x1]  }
   0x6   :  { %13 = vrot.lane.b32.xlu0 %v104_v2, %s135_s16  ;;  %25 = vrot.lane.b32.xlu1 %v106_v3, %s136_s17  ;;  %s141_s7 = smov 56   ;;  %s142_s8 = smov 48   ;;  %v113_v11 = vld [vmem:[%s209_s0 + $0x5] sm:$0x1]   ;;  %v114_v12 = vld [vmem:[%s209_s0 + $0x4] sm:$0x1]  }
   0x7   :  { %s143_s13 = smov 40   ;;  %s144_s14 = smov 32   ;;  %v115_v13 = vld [vmem:[%s209_s0 + $0x3] sm:$0x1]   ;;  %v116_v14 = vld [vmem:[%s209_s0 + $0x2] sm:$0x1]  }
   0x8   :  { %s145_s19 = smov 24   ;;  %s146_s20 = smov 16   ;;  %v117_v15 = vld [vmem:[%s209_s0 + $0x1] sm:$0x1]   ;;  %vm27_vm4 = vcmask 851712   ;;  %vm33_vm5 = vcmask 786112  }
   0x9   :  { %s147_s0 = smov 8   ;;  %vm39_vm6 = vcmask 720512   ;;  %vm45_vm7 = vcmask 654912   ;;  %vm51_vm8 = vcmask 589312   ;;  %vm57_vm9 = vcmask 523712  }
   0xa   :  { %31 = vrot.lane.b32.xlu0 %v107_v4, %s137_s24  ;;  %37 = vrot.lane.b32.xlu1 %v108_v5, %s138_s25  ;;  %vm63_vm10 = vcmask 458112   ;;  %vm69_vm11 = vcmask 392512   ;;  %vm75_vm12 = vcmask 326912   ;;  %vm81_vm13 = vcmask 261312  }
   0xb   :  { %vm87_vm14 = vcmask 195712   ;;  %vm93_vm15 = vcmask 130112  }
   0xe   :  { %43 = vrot.lane.b32.xlu0 %v109_v7, %s139_s30  ;;  %49 = vrot.lane.b32.xlu1 %v110_v8, %s140_s2 }
  0x12   :  { %55 = vrot.lane.b32.xlu0 %v111_v9, %s141_s7  ;;  %61 = vrot.lane.b32.xlu1 %v112_v10, %s142_s8 }
  0x16   :  { %67 = vrot.lane.b32.xlu0 %v113_v11, %s143_s13  ;;  %73 = vrot.lane.b32.xlu1 %v114_v12, %s144_s14 }
  0x1a   :  { %79 = vrot.lane.b32.xlu0 %v115_v13, %s145_s19  ;;  %85 = vrot.lane.b32.xlu1 %v116_v14, %s146_s20 }
  0x1e   :  { %91 = vrot.lane.b32.xlu0 %v117_v15, %s147_s0 }
  0x74   :  { %v8_v16 = vpop.permute.xlu0 %7   ;;  %v20_v17 = vpop.permute.xlu1 %19  }
  0x75   :  { %10 = vst.msk [vmem:[#allocation0] sm:$0x1] %vm9_vm1, %v8_v16  }
  0x78   :  { %v14_v18 = vpop.permute.xlu0 %13   ;;  %v26_v19 = vpop.permute.xlu1 %25  }
  0x79   :  { %16 = vst.msk [vmem:[#allocation0] sm:$0x1] %vm15_vm2, %v14_v18  }
  0x7a   :  { %22 = vst.msk [vmem:[#allocation0] sm:$0x1] %vm21_vm3, %v20_v17  }
  0x7b   :  { %28 = vst.msk [vmem:[#allocation0] sm:$0x1] %vm27_vm4, %v26_v19  }
  0x7c   :  { %v32_v20 = vpop.permute.xlu0 %31   ;;  %v38_v21 = vpop.permute.xlu1 %37  }
  0x7d   :  { %34 = vst.msk [vmem:[#allocation0] sm:$0x1] %vm33_vm5, %v32_v20  }
  0x7e   :  { %40 = vst.msk [vmem:[#allocation0] sm:$0x1] %vm39_vm6, %v38_v21  }
  0x80   :  { %v44_v22 = vpop.permute.xlu0 %43   ;;  %v50_v23 = vpop.permute.xlu1 %49  }
  0x81   :  { %46 = vst.msk [vmem:[#allocation0] sm:$0x1] %vm45_vm7, %v44_v22  }
  0x82   :  { %52 = vst.msk [vmem:[#allocation0] sm:$0x1] %vm51_vm8, %v50_v23  }
  0x84   :  { %v56_v24 = vpop.permute.xlu0 %55   ;;  %v62_v25 = vpop.permute.xlu1 %61  }
  0x85   :  { %58 = vst.msk [vmem:[#allocation0] sm:$0x1] %vm57_vm9, %v56_v24  }
  0x86   :  { %64 = vst.msk [vmem:[#allocation0] sm:$0x1] %vm63_vm10, %v62_v25  }
  0x88   :  { %v68_v26 = vpop.permute.xlu0 %67   ;;  %v74_v27 = vpop.permute.xlu1 %73  }
  0x89   :  { %70 = vst.msk [vmem:[#allocation0] sm:$0x1] %vm69_vm11, %v68_v26  }
  0x8a   :  { %76 = vst.msk [vmem:[#allocation0] sm:$0x1] %vm75_vm12, %v74_v27  }
  0x8c   :  { %v80_v28 = vpop.permute.xlu0 %79   ;;  %v86_v29 = vpop.permute.xlu1 %85  }
  0x8d   :  { %82 = vst.msk [vmem:[#allocation0] sm:$0x1] %vm81_vm13, %v80_v28  }
  0x8e   :  { %88 = vst.msk [vmem:[#allocation0] sm:$0x1] %vm87_vm14, %v86_v29  }
  0x90   :  { %v92_v30 = vpop.permute.xlu0 %91  }
  0x91   :  { %94 = vst.msk [vmem:[#allocation0] sm:$0x1] %vm93_vm15, %v92_v30  }
  0x98   :  { %v99_v31 = vld [vmem:[#allocation0] sm:$0x1] }
  0x99   :  { %102 = vst [vmem:[%s210_s1] sm:$0x1] %v99_v31 }

// kernel: onnx_wrapper_forward.1
= control target key start
LH: loop header
LB: loop body
LE: loop exit
PB: predicated region body
PF: predicated region fallthrough
CT: control target
= control target key end

     0   :  { %s779_s12 = smov 0   ;;  %s781_s13 = smov 0   ;;  %s918_s0 = inlined_call_operand.vmem [shape: f32[2,18,72], index: 0, kind: input, shape index: {}]   ;;  %s919_s1 = inlined_call_operand.vmem [shape: bf16[3,72,128], index: 1, kind: input, shape index: {}]   ;;  %s920_s2 = inlined_call_operand.vmem [shape: f32[1,128], index: 2, kind: input, shape index: {}]   ;;  %s921_s3 = inlined_call_operand.vmem [shape: f32[2,16,128], index: 3, kind: output, shape index: {}]  }
   0x1   :  { %s783_s14 = smov 0   ;;  %s785_s15 = smov 0  }
   0x2   :  { %s787_s16 = smov 0  }
   0x3 LB: > { %s22_s17 = sadd.s32 1, %s747_s14  ;;  %s25_s18 = sadd.s32 1, %s751_s15  ;;  %s755_s16 = sphi %s787_s16, %s13_s16   ;;  %s751_s15 = sphi %s785_s15, %s925_s15   ;;  %s747_s14 = sphi %s783_s14, %s924_s14   ;;  %s743_s13 = sphi %s781_s13, %s923_s13   ;;  %s739_s12 = sphi %s779_s12, %s922_s12  }
   0x4   : > { %p23_p0 = scmp.ge.s32.totalorder %s22_s17, 2  ;;  %p555_p1 = scmp.ge.s32.totalorder %s755_s16, 1 }
   0x5   : > { %p151_p2 = scmp.lt.s32.totalorder %s755_s16, 5 }
   0x6   : > { %s927_s17 = smov (%p23_p0, %s22_s17), 0  ;;  %s929_s18 = smov (!%p23_p0, %s25_s18), %s751_s15 }
   0x7   : > { %p152_p3 = pnand %p555_p1, %p151_p2  ;;  %p27_p4 = scmp.ge.s32.totalorder %s929_s18, 2 }
   0x8   : > { %p178_p5 = scmp.lt.s32.totalorder (!%p152_p3), %s743_s13, 1  ;;  %s559_s5 = sshll.u32 (!%p152_p3), %s739_s12, 3 }
   0x9   : > { %s931_s18 = smov (%p27_p4, %s929_s18), 0  ;;  %155 = sbr.rel (%p152_p3) target bundleno = 254 (0xfe), region = 32 }
   0xa   : > { %p185_p6 = scmp.lt.s32.totalorder (!%p152_p3), %s739_s12, 1 }
   0xe   : > { %v702_v0 = vld [vmem:[%s919_s1 + $0x20] ss:$0 sps:$4 sm:$0xff]   ;;  %vm238_vm0 = vcmask 1043456   ;;  %v757_v1 = vmov 0.0   ;;  %v703_v2 = vld [vmem:[%s919_s1 + $0x44] ss:$0 sps:$4 sm:$0xff]  }
   0xf   : > { %617 = vmatprep.subr.bf16.mxu0 %v757_v1  ;;  %631 = vmatprep.subr.bf16.mxu1 %v757_v1  ;;  %v240_v3 = vsel %vm238_vm0, %v702_v0, 0  ;;  %v338_v4 = vsel %vm238_vm0, %v703_v2, 0  ;;  %v704_v5 = vld [vmem:[%s919_s1 + $0x18] sm:$0xff]   ;;  %vm758_vm1 = vmmov 0   ;;  %v706_v7 = vld [vmem:[%s919_s1 + $0x10] sm:$0xff]   ;;  %s933_s13 = smov (!%p178_p5, %s743_s13), 1 }
  0x10   : > { %618 = vmatpush3.bf16.msra.mxu0 %v240_v3  ;;  %632 = vmatpush3.bf16.msra.mxu1 %v338_v4  ;;  %v705_v6 = vld [vmem:[%s919_s1 + $0x3c] sm:$0xff]   ;;  %v707_v8 = vld [vmem:[%s919_s1 + $0x34] sm:$0xff]   ;;  %s659_s4 = smul.u32 24, %s933_s13  ;;  %v708_v9 = vld [vmem:[%s919_s1 + $0x8] sm:$0xff]   ;;  %vm234_vm2 = vcmask 588800   ;;  %s935_s12 = smov (!%p185_p6, %s739_s12), 1 }
  0x11   : > { %619 = vmatprep.subr.bf16.mxu0 %v757_v1  ;;  %633 = vmatprep.subr.bf16.mxu1 %v757_v1  ;;  %v709_v10 = vld [vmem:[%s919_s1 + $0x2c] sm:$0xff]   ;;  %v710_v14 = vld [vmem:[%s919_s1] sm:$0xff]   ;;  %v712_v16 = vld [vmem:[%s919_s1 + $0x68] ss:$0 sps:$4 sm:$0xff]  }
  0x12   : > { %627 = vmatprep.mubr.msk.bf16.mxu0 %vm758_vm1, %v757_v1  ;;  %641 = vmatprep.mubr.msk.bf16.mxu1 %vm758_vm1, %v757_v1  ;;  %s182_s10 = scalar_lea.vmem %s918_s0, %s659_s4  ;;  %v711_v15 = vld [vmem:[%s919_s1 + $0x24] sm:$0xff]   ;;  %v424_v21 = vsel %vm238_vm0, %v712_v16, 0  ;;  %v714_v24 = vld [vmem:[%s919_s1 + $0x58] sm:$0xff]   ;;  %v715_v25 = vld [vmem:[%s919_s1 + $0x50] sm:$0xff]  }
  0x13   : > { %s193_s20 = scalar_lea.vmem %s182_s10, %s559_s5  ;;  %v713_v23 = vld [vmem:[%s919_s1 + $0x60] sm:$0xff]   ;;  %v716_v26 = vld [vmem:[%s919_s1 + $0x48] sm:$0xff]   ;;  %s557_s10 = sshll.u32 %s933_s13, 1 }
  0x14   : > { %620 = vmatpush3.bf16.msra.mxu0 %v704_v5  ;;  %634 = vmatpush3.bf16.msra.mxu1 %v705_v6  ;;  %v194_v11 = vld [vmem:[%s193_s20] sm:$0xff]  ;;  %v195_v12 = vld [vmem:[%s193_s20 + $0x8] sm:$0x3]  ;;  %s188_s11 = sadd.s32 %s557_s10, %s935_s12 }
  0x15   : > { %621 = vmatprep.subr.bf16.mxu0 %v757_v1  ;;  %635 = vmatprep.subr.bf16.mxu1 %v757_v1  ;;  %v289_v13 = vpack.c.bf16 %v195_v12, %v194_v11  ;;  %v197_v19 = vpack.c.bf16 %v194_v11, %v194_v11  ;;  %v566_v36 = vld [vmem:[%s920_s2] ss:$0 sm:$0xff]  ;;  %s558_s19 = sshll.u32 %s188_s11, 3 }
  0x16   : > { %s190_s22 = scalar_lea.vmem %s921_s3, %s558_s19 }
  0x17   : > { %v301_v17 = vshrl.u32 %v289_v13, 16  ;;  %v303_v18 = vshll.u32 %v289_v13, 16  ;;  %v392_v27 = vrot.slane %v289_v13, 1 }
  0x18   : > { %622 = vmatpush3.bf16.msra.mxu0 %v706_v7  ;;  %636 = vmatpush3.bf16.msra.mxu1 %v707_v8 }
  0x19   : > { %623 = vmatprep.subr.bf16.mxu0 %v757_v1  ;;  %637 = vmatprep.subr.bf16.mxu1 %v757_v1  ;;  %v305_v20 = vrot.slane %v303_v18, 1 }
  0x1b   : > { %v306_v22 = vor.u32 %v305_v20, %v301_v17 }
  0x1c   : > { %624 = vmatpush3.bf16.msra.mxu0 %v708_v9  ;;  %638 = vmatpush3.bf16.msra.mxu1 %v709_v10 }
  0x1d   : > { %625 = vmatprep.subr.bf16.mxu0 %v757_v1  ;;  %639 = vmatprep.subr.bf16.mxu1 %v757_v1 }
  0x20   : > { %626 = vmatpush3.bf16.msra.mxu0 %v710_v14  ;;  %640 = vmatpush3.bf16.msra.mxu1 %v711_v15 }
  0x21   : > { %645 = vmatprep.subr.bf16.mxu0 %v757_v1 }
  0x23   : > { %628 = vmatmul.mubr.msk.bf16.vlgmr.msra.gmra.mxu0 %vm234_vm2, %v197_v19  ;;  %642 = vmatmul.mubr.msk.bf16.vlgmr.msra.gmra.mxu1 %vm234_vm2, %v306_v22 }
  0x24   : > { %646 = vmatpush3.bf16.msra.mxu0 %v424_v21  ;;  %655 = vmatprep.mubr.msk.bf16.mxu0 %vm758_vm1, %v757_v1 }
  0x25   : > { %647 = vmatprep.subr.bf16.mxu0 %v757_v1 }
  0x28   : > { %648 = vmatpush3.bf16.msra.mxu0 %v713_v23 }
  0x29   : > { %649 = vmatprep.subr.bf16.mxu0 %v757_v1 }
  0x2c   : > { %650 = vmatpush3.bf16.msra.mxu0 %v714_v24 }
  0x2d   : > { %651 = vmatprep.subr.bf16.mxu0 %v757_v1 }
  0x30   : > { %652 = vmatpush3.bf16.msra.mxu0 %v715_v25 }
  0x31   : > { %653 = vmatprep.subr.bf16.mxu0 %v757_v1 }
  0x34   : > { %654 = vmatpush3.bf16.msra.mxu0 %v716_v26 }
  0x37   : > { %656 = vmatmul.mubr.msk.bf16.vlgmr.msra.gmra.mxu0 %vm234_vm2, %v392_v27 }
  0xe3   : > { %v276_v28 = vpop.f32.mrf.mxu0  ;;  %v374_v29 = vpop.f32.mrf.mxu1 }
  0xe4   : > { %v288_v37 = vadd.f32 %v566_v36, %v276_v28 }
  0xe5   : > { %v629_v30 = vpop.f32.mrf.mxu0  ;;  %v643_v31 = vpop.f32.mrf.mxu1 }
  0xe6   : > { %v380_v38 = vadd.f32 %v374_v29, %v288_v37 }
  0xe7   : > { %v279_v32 = vpop.f32.mrf.mxu0  ;;  %v377_v33 = vpop.f32.mrf.mxu1 }
  0xe9   : > { %v630_v34 = vpop.f32.mrf.mxu0  ;;  %v644_v35 = vpop.f32.mrf.mxu1 }
  0xf7   : > { %v460_v39 = vpop.f32.mrf.mxu0 }
  0xf8   : > { %v466_v40 = vadd.f32 %v460_v39, %v380_v38 }
  0xf9   : > { %v657_v41 = vpop.f32.mrf.mxu0 }
  0xfa   : > { %v467_v42 = vmax.f32 %v466_v40, 0.0 }
  0xfb   : > { %v463_v43 = vpop.f32.mrf.mxu0 }
  0xfc   : > { %468 = vst [vmem:[%s190_s22] sm:$0xff] %v467_v42 }
  0xfd   : > { %v658_v44 = vpop.f32.mrf.mxu0 }
  0xfe PF: > { %s13_s16 = sadd.s32 1, %s755_s16   ;;  %s922_s12 = smov %s747_s14 }
  0xff   : > { %p10_p7 = scmp.ge.s32.totalorder %s13_s16, 6   ;;  %s923_s13 = smov %s751_s15 }
 0x100   : > { %s924_s14 = smov %s927_s17  ;;  %s925_s15 = smov %s931_s18 }
 0x101   :  { %12 = sbr.rel (!%p10_p7) target bundleno = 3 (0x3), region = 65 }

</bundles_post_ra>
